<compile_context>
chip_gen: v7x
topology: tpu7x:2x2x1
jax: 0.10.0
libtpu: 0.0.40
codegen_flags: <defaults>
</compile_context>

<pallas_src>
import jax
import jax.numpy as jnp
from jax.experimental import pallas as pl
from jax.experimental.pallas import tpu as pltpu


# ----------------------------------------------------------------------------
# Helpers
# ----------------------------------------------------------------------------
def _pick_tile_m(S, desired):
    """Largest multiple of 8 <= desired that divides S (fallback: full S)."""
    t = min(desired, S)
    t -= t % 8
    while t >= 8 and S % t != 0:
        t -= 8
    if t < 8 or S % t != 0:
        t = S
    return t


# ----------------------------------------------------------------------------
# Glue: im2col (NCHW image -> [B, S, Cin*K*K] patches), plain JAX.
# Patch flatten order = (C, kh, kw), matching PyTorch conv_w.reshape(out, in*k*k).
# ----------------------------------------------------------------------------
def im2col(x, k=3, stride=2, pad=1):
    xp = jnp.pad(x, ((0, 0), (0, 0), (pad, pad), (pad, pad)))
    B, C, Hp, Wp = xp.shape
    Ho = (Hp - k) // stride + 1
    Wo = (Wp - k) // stride + 1
    cols = []
    for di in range(k):
        for dj in range(k):
            cols.append(xp[:, :, di:di + stride * Ho:stride, dj:dj + stride * Wo:stride])
    patches = jnp.stack(cols, axis=1)                 # [B, k*k, C, Ho, Wo]
    patches = patches.transpose(0, 3, 4, 2, 1)        # [B, Ho, Wo, C, k*k]
    return patches.reshape(B, Ho * Wo, C * k * k), Ho, Wo


# ----------------------------------------------------------------------------
# Fused Pallas kernel:
#   conv matmul + bias + ReLU -> projection matmul + bias + ReLU (Dropout=identity)
#   -> bf16 row-tile write of conv_feats + per-tile partial sums for fc_feats (mean finished
#      in the wrapper).
# ----------------------------------------------------------------------------
def cnn_encoder_forward(image, params, *, tile_m=2048, compute_dtype=jnp.bfloat16):
    """image: [B, Cin, H, W] (NCHW, like PyTorch).
    Returns (conv_feats [B, S, dim_out] bf16, fc_feats [B, dim_out] f32)."""
    # bf16 end-to-end for the patch stream (halves host-side intermediate + kernel input bytes).
    patches, Ho, Wo = im2col(image.astype(compute_dtype), k=3, stride=2, pad=1)
    B, S, CK = patches.shape

    conv_w = params["conv_w"]                         # [dim_cnn, Cin, 3, 3]
    dim_cnn = conv_w.shape[0]
    prj_w = params["prj_w"]                           # [dim_out, dim_cnn] (PyTorch layout)
    dim_out = prj_w.shape[0]

    # Weights as matmul operands, bf16 for the MXU, no lane padding (full-extent dims).
    w1 = conv_w.reshape(dim_cnn, -1).T.astype(compute_dtype)        # [CK, dim_cnn]
    b1 = params["conv_b"].reshape(1, dim_cnn).astype(jnp.float32)   # [1, dim_cnn]
    w2 = prj_w.T.astype(compute_dtype)                              # [dim_cnn, dim_out]
    b2 = params["prj_b"].reshape(1, dim_out).astype(jnp.float32)    # [1, dim_out]

    tm = _pick_tile_m(S, tile_m)
    num_m = S // tm

    def kernel(p_ref, w1_ref, b1_ref, w2_ref, b2_ref, cf_ref, fc_ref):
        x = p_ref[0]                                                      # [tm, CK] bf16
        h = jnp.dot(x, w1_ref[...], preferred_element_type=jnp.float32)  # MXU, f32 acc
        h = jnp.maximum(h + b1_ref[...], 0.0)                            # conv bias + ReLU
        y = jnp.dot(h.astype(w2_ref.dtype), w2_ref[...],
                    preferred_element_type=jnp.float32)                  # projection (MXU)
        y = jnp.maximum(y + b2_ref[...], 0.0)                            # Linear + ReLU
        # Dropout(p) in eval mode == identity.
        cf_ref[0] = y.astype(cf_ref.dtype)                               # bf16 writeback

        # Per-tile partial sum for the sequence mean (replicated across 8 sublanes so the output
        # block keeps an (8, dim_out)-aligned shape; wrapper reads row 0 of each tile).
        tile_sum = jnp.sum(y, axis=0, keepdims=True)                     # [1, dim_out] f32
        fc_ref[0] = jnp.broadcast_to(tile_sum, (8, dim_out))

    flops = 2 * B * S * (CK * dim_cnn + dim_cnn * dim_out)
    bytes_accessed = (
        B * S * CK * 2                                   # patches (bf16)
        + (CK * dim_cnn + dim_cnn * dim_out) * 2         # weights (bf16)
        + (dim_cnn + dim_out) * 4                        # biases (f32)
        + B * S * dim_out * 2                            # conv_feats out (bf16)
        + B * num_m * 8 * dim_out * 4                    # fc partial sums (f32)
    )

    conv_feats, fc_partial = pl.pallas_call(
        kernel,
        out_shape=(
            jax.ShapeDtypeStruct((B, S, dim_out), compute_dtype),
            jax.ShapeDtypeStruct((B, num_m * 8, dim_out), jnp.float32),
        ),
        grid=(B, num_m),
        in_specs=[
            pl.BlockSpec((1, tm, CK), lambda b, m: (b, m, 0)),
            pl.BlockSpec((CK, dim_cnn), lambda b, m: (0, 0)),   # constant map -> stays resident
            pl.BlockSpec((1, dim_cnn), lambda b, m: (0, 0)),
            pl.BlockSpec((dim_cnn, dim_out), lambda b, m: (0, 0)),
            pl.BlockSpec((1, dim_out), lambda b, m: (0, 0)),
        ],
        out_specs=(
            pl.BlockSpec((1, tm, dim_out), lambda b, m: (b, m, 0)),
            pl.BlockSpec((1, 8, dim_out), lambda b, m: (b, m, 0)),
        ),
        compiler_params=pltpu.CompilerParams(
            dimension_semantics=("parallel", "parallel"),
            vmem_limit_bytes=32 * 1024 * 1024,
        ),
        cost_estimate=pl.CostEstimate(flops=flops, transcendentals=0,
                                      bytes_accessed=bytes_accessed),
    )(patches, w1, b1, w2, b2)

    # Finish the sequence mean from the per-tile partial sums (row 0 of each 8-row tile block).
    fc_feats = fc_partial[:, ::8, :].sum(axis=1) * (1.0 / float(S))
    return conv_feats, fc_feats


# ----------------------------------------------------------------------------
# Pure-JAX reference (f32) for correctness checking.
# ----------------------------------------------------------------------------
def reference_forward(image, params):
    patches, _, _ = im2col(image, k=3, stride=2, pad=1)
    dim_cnn = params["conv_w"].shape[0]
    w1 = params["conv_w"].reshape(dim_cnn, -1).T
    h = jnp.maximum(patches @ w1 + params["conv_b"], 0.0)
    y = jnp.maximum(h @ params["prj_w"].T + params["prj_b"], 0.0)
    return y, y.mean(axis=1)


if __name__ == "__main__":
    key = jax.random.PRNGKey(0)
    k_img, k_cw, k_cb, k_pw, k_pb = jax.random.split(key, 5)

    B, Cin, H, W = 2, 3, 16, 16
    dim_cnn, dim_out = 32, 16

    image = jax.random.normal(k_img, (B, Cin, H, W), dtype=jnp.float32)
    params = {
        "conv_w": 0.1 * jax.random.normal(k_cw, (dim_cnn, Cin, 3, 3), dtype=jnp.float32),
        "conv_b": 0.1 * jax.random.normal(k_cb, (dim_cnn,), dtype=jnp.float32),
        "prj_w": 0.1 * jax.random.normal(k_pw, (dim_out, dim_cnn), dtype=jnp.float32),
        "prj_b": 0.1 * jax.random.normal(k_pb, (dim_out,), dtype=jnp.float32),
    }

    conv_feats, fc_feats = cnn_encoder_forward(image, params)
    jax.block_until_ready((conv_feats, fc_feats))

    S = (H // 2) * (W // 2)   # 8 * 8 = 64
    assert conv_feats.shape == (B, S, dim_out), conv_feats.shape
    assert fc_feats.shape == (B, dim_out), fc_feats.shape

    # fc_feats is the f32 mean of the (bf16-rounded) conv_feats over the sequence axis.
    assert jnp.allclose(fc_feats, conv_feats.astype(jnp.float32).mean(axis=1), atol=2e-2)

    # Numerical check vs. the f32 reference (bf16 MXU inputs / bf16 conv_feats, f32 accumulation).
    ref_conv, ref_fc = reference_forward(image, params)
    assert jnp.allclose(conv_feats.astype(jnp.float32), ref_conv, atol=5e-2, rtol=5e-2)
    assert jnp.allclose(fc_feats, ref_fc, atol=5e-2, rtol=5e-2)

    print("KERNEL_OK")
</pallas_src>

<mosaic_0001>
module attributes {stable_mosaic.version = 11 : i64} {
  func.func @kernel(%arg0: i32, %arg1: i32, %arg2: memref<1x64x27xbf16, #tpu.memory_space<vmem>>, %arg3: memref<27x32xbf16, #tpu.memory_space<vmem>>, %arg4: memref<1x32xf32, #tpu.memory_space<vmem>>, %arg5: memref<32x16xbf16, #tpu.memory_space<vmem>>, %arg6: memref<1x16xf32, #tpu.memory_space<vmem>>, %arg7: memref<1x64x16xbf16, #tpu.memory_space<vmem>>, %arg8: memref<1x8x16xf32, #tpu.memory_space<vmem>>) attributes {dimension_semantics = [#tpu.dimension_semantics<parallel>, #tpu.dimension_semantics<parallel>], iteration_bounds = array<i64: 2, 1>, scalar_prefetch = 0 : i64, scratch_operands = 0 : i64, tpu.core_type = #tpu.core_type<tc>, window_params = [{transform_indices = @transform_0, window_bounds = array<i64: 1, 64, 27>}, {pipeline_mode = #tpu.pipeline_mode<synchronous>, transform_indices = @transform_1, window_bounds = array<i64: 27, 32>}, {pipeline_mode = #tpu.pipeline_mode<synchronous>, transform_indices = @transform_2, window_bounds = array<i64: 1, 32>}, {pipeline_mode = #tpu.pipeline_mode<synchronous>, transform_indices = @transform_3, window_bounds = array<i64: 32, 16>}, {pipeline_mode = #tpu.pipeline_mode<synchronous>, transform_indices = @transform_4, window_bounds = array<i64: 1, 16>}, {transform_indices = @transform_5, window_bounds = array<i64: 1, 64, 16>}, {transform_indices = @transform_6, window_bounds = array<i64: 1, 8, 16>}]} {
    %c0 = arith.constant 0 : index
    %c0_0 = arith.constant 0 : index
    %c0_1 = arith.constant 0 : index
    %0 = vector.load %arg2[%c0, %c0_0, %c0_1] : memref<1x64x27xbf16, #tpu.memory_space<vmem>>, vector<1x64x27xbf16>
    %1 = vector.shape_cast %0 : vector<1x64x27xbf16> to vector<64x27xbf16>
    %c0_2 = arith.constant 0 : index
    %c0_3 = arith.constant 0 : index
    %2 = vector.load %arg3[%c0_2, %c0_3] : memref<27x32xbf16, #tpu.memory_space<vmem>>, vector<27x32xbf16>
    %cst = arith.constant dense<0.000000e+00> : vector<64x32xf32>
    %3 = tpu.matmul %1, %2, %cst {dimension_numbers = #tpu.dot_dimension_numbers<[1], [0], [0], [1], [0, 0, 1, 1], [], []>} : vector<64x27xbf16>, vector<27x32xbf16>, vector<64x32xf32> -> vector<64x32xf32>
    %c0_4 = arith.constant 0 : index
    %c0_5 = arith.constant 0 : index
    %4 = vector.load %arg4[%c0_4, %c0_5] : memref<1x32xf32, #tpu.memory_space<vmem>>, vector<1x32xf32>
    %5 = vector.broadcast %4 : vector<1x32xf32> to vector<64x32xf32>
    %6 = arith.addf %3, %5 : vector<64x32xf32>
    %cst_6 = arith.constant 0.000000e+00 : f32
    %7 = vector.broadcast %cst_6 : f32 to vector<64x32xf32>
    %8 = arith.maximumf %6, %7 : vector<64x32xf32>
    %9 = arith.truncf %8 : vector<64x32xf32> to vector<64x32xbf16>
    %c0_7 = arith.constant 0 : index
    %c0_8 = arith.constant 0 : index
    %10 = vector.load %arg5[%c0_7, %c0_8] : memref<32x16xbf16, #tpu.memory_space<vmem>>, vector<32x16xbf16>
    %cst_9 = arith.constant dense<0.000000e+00> : vector<64x16xf32>
    %11 = tpu.matmul %9, %10, %cst_9 {dimension_numbers = #tpu.dot_dimension_numbers<[1], [0], [0], [1], [0, 0, 1, 1], [], []>} : vector<64x32xbf16>, vector<32x16xbf16>, vector<64x16xf32> -> vector<64x16xf32>
    %c0_10 = arith.constant 0 : index
    %c0_11 = arith.constant 0 : index
    %12 = vector.load %arg6[%c0_10, %c0_11] : memref<1x16xf32, #tpu.memory_space<vmem>>, vector<1x16xf32>
    %13 = vector.broadcast %12 : vector<1x16xf32> to vector<64x16xf32>
    %14 = arith.addf %11, %13 : vector<64x16xf32>
    %cst_12 = arith.constant 0.000000e+00 : f32
    %15 = vector.broadcast %cst_12 : f32 to vector<64x16xf32>
    %16 = arith.maximumf %14, %15 : vector<64x16xf32>
    %17 = arith.truncf %16 : vector<64x16xf32> to vector<64x16xbf16>
    %c0_13 = arith.constant 0 : index
    %c0_14 = arith.constant 0 : index
    %c0_15 = arith.constant 0 : index
    %18 = vector.load %arg7[%c0_13, %c0_14, %c0_15] : memref<1x64x16xbf16, #tpu.memory_space<vmem>>, vector<1x64x16xbf16>
    %19 = vector.shape_cast %18 : vector<1x64x16xbf16> to vector<64x16xbf16>
    %20 = vector.shape_cast %17 : vector<64x16xbf16> to vector<1x64x16xbf16>
    tpu.vector_store %arg7[%c0_13, %c0_14, %c0_15], %20 {strides = array<i32>} : memref<1x64x16xbf16, #tpu.memory_space<vmem>>, vector<1x64x16xbf16>,
    %cst_16 = arith.constant dense<0.000000e+00> : vector<16xf32>
    %21 = vector.multi_reduction <add>, %16, %cst_16 [0] : vector<64x16xf32> to vector<16xf32>
    %22 = vector.shape_cast %21 : vector<16xf32> to vector<1x16xf32>
    %23 = vector.shape_cast %22 : vector<1x16xf32> to vector<1x16xf32>
    %24 = vector.broadcast %23 : vector<1x16xf32> to vector<8x16xf32>
    %c0_17 = arith.constant 0 : index
    %c0_18 = arith.constant 0 : index
    %c0_19 = arith.constant 0 : index
    %25 = vector.load %arg8[%c0_17, %c0_18, %c0_19] : memref<1x8x16xf32, #tpu.memory_space<vmem>>, vector<1x8x16xf32>
    %26 = vector.shape_cast %25 : vector<1x8x16xf32> to vector<8x16xf32>
    %27 = vector.shape_cast %24 : vector<8x16xf32> to vector<1x8x16xf32>
    tpu.vector_store %arg8[%c0_17, %c0_18, %c0_19], %27 {strides = array<i32>} : memref<1x8x16xf32, #tpu.memory_space<vmem>>, vector<1x8x16xf32>,
    return
  }
  func.func @transform_0(%arg0: i32, %arg1: i32) -> (i32, i32, i32) {
    %c0_i32 = arith.constant 0 : i32
    %c0_i32_0 = arith.constant 0 : i32
    return %arg0, %arg1, %c0_i32 : i32, i32, i32
  }
  func.func @transform_1(%arg0: i32, %arg1: i32) -> (i32, i32) {
    %c0_i32 = arith.constant 0 : i32
    %c0_i32_0 = arith.constant 0 : i32
    %c0_i32_1 = arith.constant 0 : i32
    return %c0_i32, %c0_i32_0 : i32, i32
  }
  func.func @transform_2(%arg0: i32, %arg1: i32) -> (i32, i32) {
    %c0_i32 = arith.constant 0 : i32
    %c0_i32_0 = arith.constant 0 : i32
    %c0_i32_1 = arith.constant 0 : i32
    return %c0_i32, %c0_i32_0 : i32, i32
  }
  func.func @transform_3(%arg0: i32, %arg1: i32) -> (i32, i32) {
    %c0_i32 = arith.constant 0 : i32
    %c0_i32_0 = arith.constant 0 : i32
    %c0_i32_1 = arith.constant 0 : i32
    return %c0_i32, %c0_i32_0 : i32, i32
  }
  func.func @transform_4(%arg0: i32, %arg1: i32) -> (i32, i32) {
    %c0_i32 = arith.constant 0 : i32
    %c0_i32_0 = arith.constant 0 : i32
    %c0_i32_1 = arith.constant 0 : i32
    return %c0_i32, %c0_i32_0 : i32, i32
  }
  func.func @transform_5(%arg0: i32, %arg1: i32) -> (i32, i32, i32) {
    %c0_i32 = arith.constant 0 : i32
    %c0_i32_0 = arith.constant 0 : i32
    return %arg0, %arg1, %c0_i32 : i32, i32, i32
  }
  func.func @transform_6(%arg0: i32, %arg1: i32) -> (i32, i32, i32) {
    %c0_i32 = arith.constant 0 : i32
    %c0_i32_0 = arith.constant 0 : i32
    return %arg0, %arg1, %c0_i32 : i32, i32, i32
  }
}

</mosaic_0001>

<bundles_post_ra>
// kernel: tpu_custom_call.1
= control target key start
LH: loop header
LB: loop body
LE: loop exit
PB: predicated region body
PF: predicated region fallthrough
CT: control target
= control target key end

     0   :  { %12 = vsyncpa [#allocation3], 0  ;;  %s1202_s0 = inlined_call_operand.vmem [shape: bf16[2,64,27], index: 0, kind: input, shape index: {}]   ;;  %s1203_s1 = inlined_call_operand.vmem [shape: bf16[27,32], index: 1, kind: input, shape index: {}]   ;;  %s1204_s2 = inlined_call_operand.vmem [shape: f32[1,32], index: 2, kind: input, shape index: {}]   ;;  %s1205_s3 = inlined_call_operand.vmem [shape: bf16[32,16], index: 3, kind: input, shape index: {}]   ;;  %s1206_s4 = inlined_call_operand.vmem [shape: f32[1,16], index: 4, kind: input, shape index: {}]   ;;  %s1207_s5 = inlined_call_operand.vmem [shape: bf16[2,64,16], index: 5, kind: output, shape index: {0}]   ;;  %s1208_s6 = inlined_call_operand.hbm [shape: f32[2,8,16], index: 6, kind: output, shape index: {1}]  }
   0x1   :  { %14 = vsyncpa [#allocation3 + $0x1], 0  ;;  %s1031_s21 = smov 0   ;;  %s1033_s22 = smov 0  }
   0x2   :  { %s1035_s23 = smov 0   ;;  %s1037_s24 = smov 0  }
   0x3   :  { %s1039_s25 = smov 0   ;;  %s1041_s26 = smov 0  }
   0x4 LB: > { %s764_s27 = sadd.s32 4294967295, %s992_s26   ;;  %s765_s28 = sadd.s32 4294967294, %s992_s26   ;;  %s992_s26 = sphi %s1041_s26, %s20_s26   ;;  %s988_s25 = sphi %s1039_s25, %s1215_s25   ;;  %s984_s24 = sphi %s1037_s24, %s1214_s24   ;;  %s980_s23 = sphi %s1035_s23, %s1213_s23   ;;  %s976_s22 = sphi %s1033_s22, %s1212_s22   ;;  %s972_s21 = sphi %s1031_s21, %s1211_s21  }
   0x5   : > { %s32_s29 = sadd.s32 1, %s988_s25  ;;  %s181_s30 = sadd.s32 1, %s980_s23 }
   0x6   : > { %p34_p0 = scmp.ge.s32.totalorder %s32_s29, 2  ;;  %p191_p1 = scmp.ne.s32.totalorder %s980_s23, %s976_s22 }
   0x7   : > { %p192_p2 = scmp.eq.s32.totalorder %s764_s27, 1  ;;  %p197_p3 = scmp.ne.s32.totalorder %s976_s22, %s972_s21 }
   0x8   : > { %s1217_s29 = smov (%p34_p0, %s32_s29), 0  ;;  %p198_p5 = scmp.eq.s32.totalorder %s765_s28, 1 }
   0x9   : > { %p1071_p4 = por %p192_p2, %p191_p1  ;;  %s176_s8 = ssub.s32 %s988_s25, %s1217_s29 }
   0xa   : > { %p768_p6 = scmp.ge.s32.totalorder %s992_s26, 1  ;;  %p179_p7 = scmp.eq.s32.totalorder %s176_s8, 0 }
   0xb   : > { %p1078_p8 = por %p198_p5, %p197_p3  ;;  %p241_p9 = scmp.lt.s32.totalorder %s992_s26, 3 }
   0xc   : > { %s1084_s10 = scalar_select %p179_p7, %s980_s23, %s181_s30  }
   0xd   : > { %p242_p10 = pnand %p768_p6, %p241_p9 }
   0xe   : > { %v906_v0 = vld [vmem:[%s1203_s1] sm:$0xff] (!%p242_p10)   ;;  %vm368_vm0 = vcmask (!%p242_p10), 1044480   ;;  %v907_v1 = vld [vmem:[%s1203_s1 + $0x8] sm:$0x3f] (!%p242_p10)   ;;  %vm369_vm1 = vcmask (!%p242_p10), 1045504   ;;  %p285_p11 = scmp.lt.s32.totalorder (!%p242_p10), %s984_s24, 1 }
   0xf   : > { %245 = sbr.rel (%p242_p10) target bundleno = 510 (0x1fe), region = 40  ;;  %826 = vmatprep.subr.bf16.mxu0 (!%p242_p10), %v906_v0  ;;  %v994_v2 = vmov (!%p242_p10), 65535   ;;  %vm355_vm2 = vcmask (!%p242_p10), 220160   ;;  %v912_v10 = vld [vmem:[%s1205_s3] sm:$0xff] (!%p242_p10)   ;;  %v913_v11 = vld [vmem:[%s1205_s3 + $0x8] sm:$0xff] (!%p242_p10)   ;;  %vm475_vm3 = vcmask (!%p242_p10), 261120  }
  0x10   : > { %827 = vmatpush3.bf16.msra.mxu0 (!%p242_p10), %v906_v0  ;;  %v370_v3 = vsel (!%p242_p10), %vm368_vm0, 4294967295, %v994_v2  ;;  %838 = vmatprep.subr.bf16.mxu1 (!%p242_p10), %v912_v10  ;;  %v774_v12 = vld [vmem:[%s1204_s2] ss:$0 sm:$0xff] (!%p242_p10)  ;;  %vm593_vm4 = vcmask (!%p242_p10), 125952   ;;  %vm602_vm5 = vcmask (!%p242_p10), 130048  }
  0x11   : > { %v371_v4 = vsel (!%p242_p10), %vm369_vm1, %v370_v3, 0  ;;  %839 = vmatpush3.bf16.msra.mxu1 (!%p242_p10), %v912_v10  ;;  %v785_v41 = vld [vmem:[%s1206_s4] ss:$0 sm:$0xff] (!%p242_p10) }
  0x12   : > { %v373_v5 = vand.u32 (!%p242_p10), %v907_v1, %v371_v4  ;;  %840 = vmatprep.subr.bf16.mxu1 (!%p242_p10), %v913_v11 }
  0x14   : > { %828 = vmatprep.subr.bf16.mxu0 (!%p242_p10), %v373_v5 }
  0x15   : > { %829 = vmatpush3.bf16.msra.mxu0 (!%p242_p10), %v373_v5  ;;  %841 = vmatpush3.bf16.msra.mxu1 (!%p242_p10), %v913_v11 }
  0x16   : > { %s1094_s15 = scalar_select %p285_p11, %s984_s24, 1 }
  0x18   : > { %s804_s16 = sshll.u32 %s1094_s15, 5  ;;  %s281_s15 = sand.u32 1, %s976_s22  }
  0x19   : > { %s292_s19 = scalar_lea.vmem %s1202_s0, %s804_s16  ;;  %s1123_s18 = scalar_lea.vmem %s1207_s5, %s804_s16 }
  0x1a   : > { %v908_v6 = vld [vmem:[%s292_s19] sm:$0xff]   ;;  %v909_v7 = vld [vmem:[%s292_s19 + $0x8] sm:$0xff]   ;;  %v910_v8 = vld [vmem:[%s292_s19 + $0x10] sm:$0xff]   ;;  %s769_s16 = sshll.u32 %s281_s15, 3  ;;  %s635_s11 = scalar_lea.sflag [#allocation3], %s281_s15 }
  0x1b   : > { %830 = vmatprep.mubr.msk.bf16.mxu0 %vm355_vm2, %v908_v6  ;;  %v911_v9 = vld [vmem:[%s292_s19 + $0x18] sm:$0xff]   ;;  %s801_s19 = sshll.u32 %s984_s24, 7  ;;  %s283_s20 = scalar_lea.vmem [#allocation2], %s769_s16 }
  0x1c   : > { %831 = vmatmul.mubr.msk.bf16.vlgmr.msra.gmra.mrb[0].mxu0 %vm355_vm2, %v909_v7  ;;  %s653_s27 = sshll.u32 %s283_s20, 4  ;;  %s1154_s8 = scalar_lea.hbm %s1208_s6, %s801_s19  ;;  %s1156_s27 = int_to_ptr.vmem [resolvable:$true] %s653_s27 }
  0x1d   : > { %834 = vmatprep.mubr.msk.bf16.mxu0 %vm355_vm2, %v910_v8  ;;  %s914_s12 = scalar_lea.vmem %s1156_s27, 128  ;;  %s995_s24 = smov [#allocation2]  }
  0x1e   : > { %p915_p12 = scmp.ne.s32.totalorder %s1156_s27, %s914_s12  ;;  %s918_s13 = sshll.u32 %s995_s24, 4  ;;  %s919_s13 = int_to_ptr.vmem [resolvable:$false] %s918_s13 }
  0x1f   : > { %s920_s14 = scalar_lea.vmem %s919_s13, 256  ;;  %p921_p1 = scmp.lt.s32.totalorder %s1156_s27, %s919_s13 }
  0x20   : > { %p916_p13 = pnand %p915_p12, %p1071_p4  ;;  %p922_p2 = scmp.lt.s32.totalorder %s920_s14, %s914_s12 }
  0x22   : > { %p917_p0 = pneg %p916_p13  ;;  %p923_p3 = por %p922_p2, %p921_p1 }
  0x24   : > { %835 = vmatmul.mubr.msk.bf16.gmra.mrb[4].mxu0 %vm355_vm2, %v911_v9  ;;  %p924_p5 = pnand %p923_p3, %p917_p0 }
  0xef   : > { %v832_v13 = vpop.f32.mrb[0].mxu0 }
  0xf0   : > { %v418_v14 = vadd.f32 %v832_v13, %v774_v12  ;;  %v409_v15 = vpop.f32.mrb[1].mxu0 }
  0xf1   : > { %v410_v16 = vadd.f32 %v774_v12, %v409_v15  ;;  %v833_v17 = vpop.f32.mrb[2].mxu0 }
  0xf2   : > { %v421_v18 = vadd.f32 %v833_v17, %v774_v12  ;;  %v412_v19 = vpop.f32.mrb[3].mxu0  ;;  %v442_v21 = vmax.f32 %v418_v14, 0.0 }
  0xf3   : > { %v413_v20 = vadd.f32 %v774_v12, %v412_v19  ;;  %v440_v23 = vmax.f32 %v410_v16, 0.0 }
  0xf4   : > { %v443_v22 = vmax.f32 %v421_v18, 0.0 }
  0xf5   : > { %v441_v24 = vmax.f32 %v413_v20, 0.0 }
  0xf6   : > { %v449_v25 = vpack.c.bf16 %v443_v22, %v442_v21 }
  0xf7   : > { %v836_v26 = vpop.f32.mrb[4].mxu0  ;;  %v448_v27 = vpack.c.bf16 %v441_v24, %v440_v23 }
  0xf8   : > { %v434_v28 = vadd.f32 %v836_v26, %v774_v12  ;;  %v425_v29 = vpop.f32.mrb[5].mxu0 }
  0xf9   : > { %v426_v30 = vadd.f32 %v774_v12, %v425_v29  ;;  %v837_v31 = vpop.f32.mrb[6].mxu0  ;;  %842 = vmatprep.mubr.msk.bf16.mxu1 %vm475_vm3, %v448_v27 }
  0xfa   : > { %v437_v32 = vadd.f32 %v837_v31, %v774_v12  ;;  %v428_v33 = vpop.f32.mrb[7].mxu0  ;;  %843 = vmatmul.mubr.msk.bf16.vlgmr.msra.gmra.mrb[0].mxu1 %vm475_vm3, %v449_v25  ;;  %v446_v35 = vmax.f32 %v434_v28, 0.0 }
  0xfb   : > { %v429_v34 = vadd.f32 %v774_v12, %v428_v33  ;;  %v444_v37 = vmax.f32 %v426_v30, 0.0 }
  0xfc   : > { %v447_v36 = vmax.f32 %v437_v32, 0.0 }
  0xfd   : > { %v445_v38 = vmax.f32 %v429_v34, 0.0 }
  0xfe   : > { %v451_v39 = vpack.c.bf16 %v447_v36, %v446_v35 }
  0xff   : > { %v450_v40 = vpack.c.bf16 %v445_v38, %v444_v37 }
 0x101   : > { %846 = vmatprep.mubr.msk.bf16.mxu1 %vm475_vm3, %v450_v40 }
 0x102   : > { %847 = vmatmul.mubr.msk.bf16.gmra.mrb[4].mxu1 %vm475_vm3, %v451_v39 }
 0x1cd   : > { %v844_v42 = vpop.f32.mrb[0].mxu1 }
 0x1ce   : > { %v531_v43 = vadd.f32 %v844_v42, %v785_v41  ;;  %v522_v44 = vpop.f32.mrb[1].mxu1 }
 0x1cf   : > { %v523_v45 = vadd.f32 %v785_v41, %v522_v44  ;;  %v845_v46 = vpop.f32.mrb[2].mxu1 }
 0x1d0   : > { %v555_v47 = vmax.f32 %v531_v43, 0.0  ;;  %v534_v48 = vadd.f32 %v845_v46, %v785_v41  ;;  %v525_v49 = vpop.f32.mrb[3].mxu1 }
 0x1d1   : > { %v553_v50 = vmax.f32 %v523_v45, 0.0  ;;  %v526_v51 = vadd.f32 %v785_v41, %v525_v49 }
 0x1d2   : > { %v808_v52 = vpack.c.bf16 %v555_v47, %v555_v47  ;;  %v556_v53 = vmax.f32 %v534_v48, 0.0  ;;  %v606_v0 = vsel %vm602_vm5, %v555_v47, 0.0 }
 0x1d3   : > { %v806_v54 = vpack.c.bf16 %v553_v50, %v553_v50  ;;  %v554_v55 = vmax.f32 %v526_v51, 0.0  ;;  %v603_v57 = vsel %vm602_vm5, %v553_v50, 0.0 }
 0x1d4   : > { %596 = vst.msk [vmem:[%s1123_s18 + $0x8] sm:$0xf] %vm593_vm4, %v808_v52  ;;  %v809_v56 = vpack.c.bf16 %v556_v53, %v556_v53  ;;  %v608_v7 = vsel %vm602_vm5, %v556_v53, 0.0 }
 0x1d5   : > { %594 = vst.msk [vmem:[%s1123_s18] sm:$0xf] %vm593_vm4, %v806_v54  ;;  %v807_v58 = vpack.c.bf16 %v554_v55, %v554_v55  ;;  %v604_v59 = vsel %vm602_vm5, %v554_v55, 0.0  ;;  %v848_v60 = vpop.f32.mrb[4].mxu1 }
 0x1d6   : > { %597 = vst.msk [vmem:[%s1123_s18 + $0xc] sm:$0xf] %vm593_vm4, %v809_v56  ;;  %v605_v61 = vadd.f32 %v604_v59, %v603_v57  ;;  %v547_v62 = vadd.f32 %v848_v60, %v785_v41  ;;  %v538_v63 = vpop.f32.mrb[5].mxu1 }
 0x1d7   : > { %595 = vst.msk [vmem:[%s1123_s18 + $0x4] sm:$0xf] %vm593_vm4, %v807_v58  ;;  %v539_v1 = vadd.f32 %v785_v41, %v538_v63  ;;  %v849_v2 = vpop.f32.mrb[6].mxu1 }
 0x1d8   : > { %v607_v3 = vadd.f32 %v606_v0, %v605_v61  ;;  %v559_v4 = vmax.f32 %v547_v62, 0.0  ;;  %v550_v5 = vadd.f32 %v849_v2, %v785_v41  ;;  %v541_v6 = vpop.f32.mrb[7].mxu1 }
 0x1d9   : > { %v557_v8 = vmax.f32 %v539_v1, 0.0  ;;  %v542_v9 = vadd.f32 %v785_v41, %v541_v6 }
 0x1da   : > { %v812_v10 = vpack.c.bf16 %v559_v4, %v559_v4  ;;  %v609_v11 = vadd.f32 %v608_v7, %v607_v3  ;;  %v560_v12 = vmax.f32 %v550_v5, 0.0  ;;  %v614_v21 = vsel %vm602_vm5, %v559_v4, 0.0 }
 0x1db   : > { %v810_v13 = vpack.c.bf16 %v557_v8, %v557_v8  ;;  %v610_v14 = vsel %vm602_vm5, %v557_v8, 0.0  ;;  %v558_v15 = vmax.f32 %v542_v9, 0.0 }
 0x1dc   : > { %600 = vst.msk [vmem:[%s1123_s18 + $0x18] sm:$0xf] %vm593_vm4, %v812_v10  ;;  %v611_v16 = vadd.f32 %v610_v14, %v609_v11  ;;  %v813_v17 = vpack.c.bf16 %v560_v12, %v560_v12  ;;  %v616_v23 = vsel %vm602_vm5, %v560_v12, 0.0 }
 0x1dd   : > { %598 = vst.msk [vmem:[%s1123_s18 + $0x10] sm:$0xf] %vm593_vm4, %v810_v13  ;;  %v811_v18 = vpack.c.bf16 %v558_v15, %v558_v15  ;;  %v612_v19 = vsel %vm602_vm5, %v558_v15, 0.0 }
 0x1de   : > { %601 = vst.msk [vmem:[%s1123_s18 + $0x1c] sm:$0xf] %vm593_vm4, %v813_v17  ;;  %v613_v20 = vadd.f32 %v612_v19, %v611_v16 }
 0x1df   : > { %599 = vst.msk [vmem:[%s1123_s18 + $0x14] sm:$0xf] %vm593_vm4, %v811_v18 }
 0x1e0   : > { %v615_v22 = vadd.f32 %v614_v21, %v613_v20 }
 0x1e2   : > { %v617_v24 = vadd.f32 %v616_v23, %v615_v22 }
 0x1e4   : > { %v618_v25 = vrot.slane %v617_v24, 4 }
 0x1e6   : > { %v619_v26 = vadd.f32 %v618_v25, %v617_v24 }
 0x1e8   : > { %v620_v27 = vrot.slane %v619_v26, 2 }
 0x1ea   : > { %v621_v28 = vadd.f32 %v620_v27, %v619_v26 }
 0x1ec   : > { %v622_v29 = vrot.slane %v621_v28, 1 }
 0x1ee   : > { %v623_v30 = vadd.f32 %v622_v29, %v621_v28 }
 0x1f0   : > { %624 = vst.msk [vmem:[%s283_s20] sm:$0xff] %vm602_vm5, %v623_v30 }
 0x1f1   : > { %927 = shalt.err (!%p924_p5)
}
 0x1f2   : > { %s928_s17 = scalar_lea.hbm %s1154_s8, 128  ;;  %s932_s16 = scalar_lea.hbm %s1208_s6, 256 }
 0x1f3   : > { %p929_p6 = scmp.ne.s32.totalorder %s1154_s8, %s928_s17  ;;  %p933_p10 = scmp.lt.u32.totalorder %s1154_s8, %s1208_s6 }
 0x1f4   : > { %p934_p11 = scmp.lt.u32.totalorder %s932_s16, %s928_s17  ;;  %p936_p13 = scmp.lt.u32.totalorder %s928_s17, %s1154_s8 }
 0x1f5   : > { %p930_p7 = pnand %p929_p6, %p1071_p4 }
 0x1f6   : > { %p935_p12 = por %p934_p11, %p933_p10 }
 0x1f7   : > { %p931_p9 = pneg %p930_p7 }
 0x1f8   : > { %p937_p0 = por %p936_p13, %p935_p12 }
 0x1fa   : > { %p938_p1 = pnand %p937_p0, %p931_p9 }
 0x1fc   : > { %941 = shalt.err (!%p938_p1)
}
 0x1fd   : > { %850 = dma.vmem_to_hbm [thread:$0]  (%p1071_p4), %s1156_s27, 128, %s1154_s8, %s635_s11  }
 0x1fe PF: > { %p856_p2 = scmp.ge.s32.totalorder %s992_s26, 2  ;;  %s677_s28 = sand.u32 1, %s972_s21  }
 0x1ff   : > { %s678_s30 = scalar_lea.sflag [#allocation3], %s677_s28 }
 0x200   : > { %p853_p3 = pnand %p856_p2, %p1078_p8 }
 0x202   : > { %967 = dma.done.wait (!%p853_p3), %s678_s30, 128  }
 0x203   : > { %969 = vsyncadd (!%p853_p3), %s678_s30, 4294967168  ;;  %s20_s26 = sadd.s32 1, %s992_s26   ;;  %s1211_s21 = smov %s976_s22 }
 0x204   : > { %p17_p5 = scmp.ge.s32.totalorder %s20_s26, 4   ;;  %s1212_s22 = smov %s980_s23 }
 0x205   : > { %s1213_s23 = smov %s1084_s10  ;;  %s1214_s24 = smov %s988_s25 }
 0x206   : > { %s1215_s25 = smov %s1217_s29  ;;  %19 = sbr.rel (!%p17_p5) target bundleno = 4 (0x4), region = 87 }
 0x20d   :  { %683 = vsyncpa [#allocation3], 1 }
 0x20e   :  { %685 = vsyncpa [#allocation3 + $0x1], 1 }

</bundles_post_ra>
